<compile_context>
chip_gen: v7x
topology: tpu7x:2x2x1
jax: 0.10.0
libtpu: 0.0.40
codegen_flags: <defaults>
</compile_context>

<pallas_src>
import functools

import jax
import jax.numpy as jnp
from jax.experimental import pallas as pl
from jax.experimental.pallas import tpu as pltpu

LANE = 128  # hidden / class dims are zero-padded to one full vreg lane width


def gcn2l_kernel(x_ref, a_ref, p_ref, w_ref, b_ref, out_ref, *, in_dim):
    # Per-step tile (grid axis is "parallel"):
    #   x_ref  : (1, M, F)       node features, M = GB*N graphs stacked
    #   a_ref  : (1, M, M)       block-diagonal normalized adjacency
    #   p_ref  : (R, M)          mean-pool matrix (row j averages graph j)
    #   w_ref  : (3, 128, 128)   [W1; W2; W3] zero-padded to 128x128
    #   b_ref  : (8, 128)        rows 0/1/2 = b1/b2/b3 (zero-padded)
    #   out_ref: (1, R, 128)     row j, cols [:C] = logits of graph j
    x = x_ref[0]                     # [M, F]
    a = a_ref[0]                     # [M, M]
    p = p_ref[...]                   # [R, M]
    w1 = w_ref[0][:in_dim, :]        # [F, 128]  (static slice of loaded tile)
    w2 = w_ref[1]                    # [128, 128]
    w3 = w_ref[2]                    # [128, 128]
    b1 = b_ref[0:1, :]               # [1, 128]
    b2 = b_ref[1:2, :]
    b3 = b_ref[2:3, :]

    # --- GCNConv 1: ReLU(A_hat @ (x @ W1) + b1)  (zero-padded cols stay 0) ---
    h1 = jnp.dot(a, jnp.dot(x, w1, preferred_element_type=jnp.float32),
                 preferred_element_type=jnp.float32) + b1
    h1 = jnp.maximum(h1, 0.0)

    # --- GCNConv 2: ReLU(A_hat @ (h1 @ W2) + b2) ---
    h2 = jnp.dot(a, jnp.dot(h1, w2, preferred_element_type=jnp.float32),
                 preferred_element_type=jnp.float32) + b2
    h2 = jnp.maximum(h2, 0.0)

    # --- readout + head: mean pool FIRST (cuts W3 FLOPs by N), then Linear ---
    pooled = jnp.dot(p, h2, preferred_element_type=jnp.float32)        # [R,128]
    out_ref[0] = jnp.dot(pooled, w3, preferred_element_type=jnp.float32) + b3


def _pad2d(mat, rows, cols):
    out = jnp.zeros((rows, cols), jnp.float32)
    return out.at[:mat.shape[0], :mat.shape[1]].set(mat.astype(jnp.float32))


def pack_params(w1, b1, w2, b2, w3, b3):
    """Pack all parameters into two grid-resident slabs (2 DMAs total)."""
    wslab = jnp.stack([_pad2d(w1, LANE, LANE),
                       _pad2d(w2, LANE, LANE),
                       _pad2d(w3, LANE, LANE)], axis=0)            # [3,128,128]
    bslab = jnp.zeros((8, LANE), jnp.float32)
    bslab = (bslab.at[0, :b1.shape[0]].set(b1.astype(jnp.float32))
                  .at[1, :b2.shape[0]].set(b2.astype(jnp.float32))
                  .at[2, :b3.shape[0]].set(b3.astype(jnp.float32)))
    return wslab, bslab


def _tensorcores_per_device():
    """Best-effort TensorCores-per-device count (v7x/v4 megacore -> 2)."""
    try:
        info = pltpu.get_tpu_info()
        for name in ("num_cores", "num_tensorcores", "tensorcores_per_chip"):
            n = getattr(info, name, None)
            if n:
                return max(1, int(n))
    except Exception:
        pass
    try:
        dev = jax.devices()[0]
        n = getattr(dev, "num_cores", None)
        if n:
            return max(1, int(n))
        kind = str(getattr(dev, "device_kind", "")).lower()
        if "v4" in kind or "v7" in kind or "7x" in kind:
            return 2
    except Exception:
        pass
    return 1


def gcn2l_forward(x, a_hat, w1, b1, w2, b2, w3, b3, num_steps=None):
    """Batched forward.

    x      : [G, N, F]   node features per graph
    a_hat  : [G, N, N]   normalized adjacency per graph
    returns: [G, C]      logits per graph
    """
    g, n, f = x.shape
    h = w1.shape[1]
    c = w3.shape[1]
    assert f <= LANE and h <= LANE and c <= LANE

    # Grid sizing: 1 step on single-TC chips (v5e/v6e), n_tc steps on
    # multi-TC chips (v7x) so the "parallel" axis keeps every core busy.
    if num_steps is None:
        n_tc = _tensorcores_per_device()
        num_steps = n_tc if (g % n_tc == 0 and g >= n_tc) else 1
    num_steps = max(1, min(int(num_steps), g))
    assert g % num_steps == 0, (g, num_steps)
    gb = g // num_steps          # graphs fused per grid step
    m = gb * n                   # matmul M-dim per step
    rows = ((gb + 7) // 8) * 8   # output sublane rows (>= 8, multiple of 8)

    # Node features: NOT lane-padded (F is the full block extent).
    x_steps = x.astype(jnp.float32).reshape(num_steps, m, f)

    # Block-diagonal A_hat per step: one [M,M]x[M,128] matmul per layer instead
    # of GB tiny [N,N]x[N,128] matmuls.  (Padded off-diagonal blocks are zero.)
    a_f32 = a_hat.astype(jnp.float32).reshape(num_steps, gb, n, n)
    a_bd = jnp.zeros((num_steps, m, m), jnp.float32)
    for j in range(gb):
        a_bd = a_bd.at[:, j * n:(j + 1) * n, j * n:(j + 1) * n].set(a_f32[:, j])

    # Grid-resident mean-pool matrix: row j averages graph j's N rows; rows
    # >= GB are zero padding and get sliced off below.
    pool = jnp.zeros((rows, m), jnp.float32)
    for j in range(gb):
        pool = pool.at[j, j * n:(j + 1) * n].set(1.0 / n)

    wslab, bslab = pack_params(w1, b1, w2, b2, w3, b3)

    flops_step = (2 * m * f * LANE          # X @ W1
                  + 2 * m * m * LANE        # A_hat @ (.)
                  + 2 * m * LANE * LANE     # h1 @ W2
                  + 2 * m * m * LANE        # A_hat @ (.)
                  + 2 * rows * m * LANE     # pool @ h2
                  + 2 * rows * LANE * LANE)  # pooled @ W3
    bytes_accessed = 4 * (x_steps.size + a_bd.size + pool.size
                          + wslab.size + bslab.size + num_steps * rows * LANE)

    out = pl.pallas_call(
        functools.partial(gcn2l_kernel, in_dim=f),
        out_shape=jax.ShapeDtypeStruct((num_steps, rows, LANE), jnp.float32),
        grid=(num_steps,),
        in_specs=[
            pl.BlockSpec((1, m, f), lambda i: (i, 0, 0)),       # per-step X
            pl.BlockSpec((1, m, m), lambda i: (i, 0, 0)),       # per-step A_hat
            pl.BlockSpec((rows, m), lambda i: (0, 0)),          # pool: resident
            pl.BlockSpec((3, LANE, LANE), lambda i: (0, 0, 0)),  # W: resident
            pl.BlockSpec((8, LANE), lambda i: (0, 0)),          # b: resident
        ],
        out_specs=pl.BlockSpec((1, rows, LANE), lambda i: (i, 0, 0)),
        compiler_params=pltpu.CompilerParams(
            dimension_semantics=("parallel",)),
        cost_estimate=pl.CostEstimate(
            flops=num_steps * flops_step,
            transcendentals=0,
            bytes_accessed=bytes_accessed),
    )(x_steps, a_bd, pool, wslab, bslab)

    # TODO(synk): for ragged batches (padded node rows) a node mask is needed
    # before pooling; this benchmark has exactly N real nodes per graph.
    return out[:, :gb, :c].reshape(g, c)


def build_normalized_adjacency(edge_index, num_nodes):
    """Dense D^{-1/2}(A + I)D^{-1/2}, matching PyG gcn_norm with add_self_loops.

    NOTE: row-sum degrees + minimum-dedupe match PyG's flow='source_to_target'
    only for symmetric, unweighted edge_index (what this benchmark uses).
    """
    src = edge_index[0]
    dst = edge_index[1]
    adj = jnp.zeros((num_nodes, num_nodes), jnp.float32)
    adj = adj.at[dst, src].add(1.0)
    adj = jnp.minimum(adj, 1.0)  # dedupe repeated edges (keeps it 0/1)
    adj = adj + jnp.eye(num_nodes, dtype=jnp.float32)
    deg = adj.sum(axis=1)
    dinv = jnp.where(deg > 0, 1.0 / jnp.sqrt(deg), 0.0)
    return adj * dinv[:, None] * dinv[None, :]


def _ring_with_chords(n, k):
    """Undirected ring + chord-(k) graph, edge_index [2, E] (symmetric)."""
    idx = jnp.arange(n)
    nxt = (idx + 1) % n
    chd = (idx + k) % n
    src = jnp.concatenate([idx, nxt, idx, chd])
    dst = jnp.concatenate([nxt, idx, chd, idx])
    return jnp.stack([src, dst], axis=0).astype(jnp.int32)


if __name__ == "__main__":
    # Small synthetic config: dim_node=16, dim_hidden=32, num_classes=4,
    # G=4 graphs of N=16 nodes each (graph-level model -> GlobalMeanPool).
    G = 4
    N = 16
    DIM_NODE = 16
    DIM_HIDDEN = 32
    NUM_CLASSES = 4

    key = jax.random.PRNGKey(0)
    k_x, k_w1, k_b1, k_w2, k_b2, k_w3, k_b3 = jax.random.split(key, 7)

    # Node features for all graphs.
    x = jax.random.normal(k_x, (G, N, DIM_NODE), dtype=jnp.float32)

    # A slightly different undirected graph per batch element.
    a_hat = jnp.stack(
        [build_normalized_adjacency(_ring_with_chords(N, g + 2), N)
         for g in range(G)], axis=0)                              # [G, N, N]

    # Deterministic parameter init (shapes from the module __init__).
    w1 = jax.random.normal(k_w1, (DIM_NODE, DIM_HIDDEN), jnp.float32) * 0.1
    b1 = jax.random.normal(k_b1, (DIM_HIDDEN,), jnp.float32) * 0.1
    w2 = jax.random.normal(k_w2, (DIM_HIDDEN, DIM_HIDDEN), jnp.float32) * 0.1
    b2 = jax.random.normal(k_b2, (DIM_HIDDEN,), jnp.float32) * 0.1
    w3 = jax.random.normal(k_w3, (DIM_HIDDEN, NUM_CLASSES), jnp.float32) * 0.1
    b3 = jax.random.normal(k_b3, (NUM_CLASSES,), jnp.float32) * 0.1

    out = gcn2l_forward(x, a_hat, w1, b1, w2, b2, w3, b3)
    jax.block_until_ready(out)

    # Pure-JAX reference (per graph).
    refs = []
    for g in range(G):
        h1 = jnp.maximum(a_hat[g] @ (x[g] @ w1) + b1, 0.0)
        h2 = jnp.maximum(a_hat[g] @ (h1 @ w2) + b2, 0.0)
        refs.append(jnp.mean(h2, axis=0) @ w3 + b3)
    ref = jnp.stack(refs, axis=0)                                 # [G, C]

    assert out.shape == (G, NUM_CLASSES), out.shape
    assert jnp.allclose(out, ref, atol=1e-4, rtol=1e-4), (
        jnp.max(jnp.abs(out - ref)))

    print("KERNEL_OK")
</pallas_src>

<mosaic_0001>
module attributes {stable_mosaic.version = 11 : i64} {
  func.func @gcn2l_kernel(%arg0: i32, %arg1: memref<1x64x16xf32, #tpu.memory_space<vmem>>, %arg2: memref<1x64x64xf32, #tpu.memory_space<vmem>>, %arg3: memref<8x64xf32, #tpu.memory_space<vmem>>, %arg4: memref<3x128x128xf32, #tpu.memory_space<vmem>>, %arg5: memref<8x128xf32, #tpu.memory_space<vmem>>, %arg6: memref<1x8x128xf32, #tpu.memory_space<vmem>>) attributes {dimension_semantics = [#tpu.dimension_semantics<parallel>], iteration_bounds = array<i64: 1>, scalar_prefetch = 0 : i64, scratch_operands = 0 : i64, tpu.core_type = #tpu.core_type<tc>, window_params = [{transform_indices = @transform_0, window_bounds = array<i64: 1, 64, 16>}, {transform_indices = @transform_1, window_bounds = array<i64: 1, 64, 64>}, {pipeline_mode = #tpu.pipeline_mode<synchronous>, transform_indices = @transform_2, window_bounds = array<i64: 8, 64>}, {pipeline_mode = #tpu.pipeline_mode<synchronous>, transform_indices = @transform_3, window_bounds = array<i64: 3, 128, 128>}, {pipeline_mode = #tpu.pipeline_mode<synchronous>, transform_indices = @transform_4, window_bounds = array<i64: 8, 128>}, {transform_indices = @transform_5, window_bounds = array<i64: 1, 8, 128>}]} {
    %c0 = arith.constant 0 : index
    %c0_0 = arith.constant 0 : index
    %c0_1 = arith.constant 0 : index
    %0 = vector.load %arg1[%c0, %c0_0, %c0_1] : memref<1x64x16xf32, #tpu.memory_space<vmem>>, vector<1x64x16xf32>
    %1 = vector.shape_cast %0 : vector<1x64x16xf32> to vector<64x16xf32>
    %c0_2 = arith.constant 0 : index
    %c0_3 = arith.constant 0 : index
    %c0_4 = arith.constant 0 : index
    %2 = vector.load %arg2[%c0_2, %c0_3, %c0_4] : memref<1x64x64xf32, #tpu.memory_space<vmem>>, vector<1x64x64xf32>
    %3 = vector.shape_cast %2 : vector<1x64x64xf32> to vector<64x64xf32>
    %c0_5 = arith.constant 0 : index
    %c0_6 = arith.constant 0 : index
    %4 = vector.load %arg3[%c0_5, %c0_6] : memref<8x64xf32, #tpu.memory_space<vmem>>, vector<8x64xf32>
    %c0_7 = arith.constant 0 : index
    %c0_8 = arith.constant 0 : index
    %c0_9 = arith.constant 0 : index
    %5 = vector.load %arg4[%c0_7, %c0_8, %c0_9] : memref<3x128x128xf32, #tpu.memory_space<vmem>>, vector<1x128x128xf32>
    %6 = vector.shape_cast %5 : vector<1x128x128xf32> to vector<128x128xf32>
    %7 = vector.extract_strided_slice %6 {offsets = [0, 0], sizes = [16, 128], strides = [1, 1]} : vector<128x128xf32> to vector<16x128xf32>
    %c1 = arith.constant 1 : index
    %c0_10 = arith.constant 0 : index
    %c0_11 = arith.constant 0 : index
    %8 = vector.load %arg4[%c1, %c0_10, %c0_11] : memref<3x128x128xf32, #tpu.memory_space<vmem>>, vector<1x128x128xf32>
    %9 = vector.shape_cast %8 : vector<1x128x128xf32> to vector<128x128xf32>
    %c2 = arith.constant 2 : index
    %c0_12 = arith.constant 0 : index
    %c0_13 = arith.constant 0 : index
    %10 = vector.load %arg4[%c2, %c0_12, %c0_13] : memref<3x128x128xf32, #tpu.memory_space<vmem>>, vector<1x128x128xf32>
    %11 = vector.shape_cast %10 : vector<1x128x128xf32> to vector<128x128xf32>
    %c0_14 = arith.constant 0 : index
    %c0_15 = arith.constant 0 : index
    %12 = vector.load %arg5[%c0_14, %c0_15] : memref<8x128xf32, #tpu.memory_space<vmem>>, vector<1x128xf32>
    %c1_16 = arith.constant 1 : index
    %c0_17 = arith.constant 0 : index
    %13 = vector.load %arg5[%c1_16, %c0_17] : memref<8x128xf32, #tpu.memory_space<vmem>>, vector<1x128xf32>
    %c2_18 = arith.constant 2 : index
    %c0_19 = arith.constant 0 : index
    %14 = vector.load %arg5[%c2_18, %c0_19] : memref<8x128xf32, #tpu.memory_space<vmem>>, vector<1x128xf32>
    %cst = arith.constant dense<0.000000e+00> : vector<64x128xf32>
    %15 = tpu.matmul %1, %7, %cst {dimension_numbers = #tpu.dot_dimension_numbers<[1], [0], [0], [1], [0, 0, 1, 1], [], []>} : vector<64x16xf32>, vector<16x128xf32>, vector<64x128xf32> -> vector<64x128xf32>
    %cst_20 = arith.constant dense<0.000000e+00> : vector<64x128xf32>
    %16 = tpu.matmul %3, %15, %cst_20 {dimension_numbers = #tpu.dot_dimension_numbers<[1], [0], [0], [1], [0, 0, 1, 1], [], []>} : vector<64x64xf32>, vector<64x128xf32>, vector<64x128xf32> -> vector<64x128xf32>
    %17 = vector.broadcast %12 : vector<1x128xf32> to vector<64x128xf32>
    %18 = arith.addf %16, %17 : vector<64x128xf32>
    %cst_21 = arith.constant 0.000000e+00 : f32
    %19 = vector.broadcast %cst_21 : f32 to vector<64x128xf32>
    %20 = arith.maximumf %18, %19 : vector<64x128xf32>
    %cst_22 = arith.constant dense<0.000000e+00> : vector<64x128xf32>
    %21 = tpu.matmul %20, %9, %cst_22 {dimension_numbers = #tpu.dot_dimension_numbers<[1], [0], [0], [1], [0, 0, 1, 1], [], []>} : vector<64x128xf32>, vector<128x128xf32>, vector<64x128xf32> -> vector<64x128xf32>
    %cst_23 = arith.constant dense<0.000000e+00> : vector<64x128xf32>
    %22 = tpu.matmul %3, %21, %cst_23 {dimension_numbers = #tpu.dot_dimension_numbers<[1], [0], [0], [1], [0, 0, 1, 1], [], []>} : vector<64x64xf32>, vector<64x128xf32>, vector<64x128xf32> -> vector<64x128xf32>
    %23 = vector.broadcast %13 : vector<1x128xf32> to vector<64x128xf32>
    %24 = arith.addf %22, %23 : vector<64x128xf32>
    %cst_24 = arith.constant 0.000000e+00 : f32
    %25 = vector.broadcast %cst_24 : f32 to vector<64x128xf32>
    %26 = arith.maximumf %24, %25 : vector<64x128xf32>
    %cst_25 = arith.constant dense<0.000000e+00> : vector<8x128xf32>
    %27 = tpu.matmul %4, %26, %cst_25 {dimension_numbers = #tpu.dot_dimension_numbers<[1], [0], [0], [1], [0, 0, 1, 1], [], []>} : vector<8x64xf32>, vector<64x128xf32>, vector<8x128xf32> -> vector<8x128xf32>
    %cst_26 = arith.constant dense<0.000000e+00> : vector<8x128xf32>
    %28 = tpu.matmul %27, %11, %cst_26 {dimension_numbers = #tpu.dot_dimension_numbers<[1], [0], [0], [1], [0, 0, 1, 1], [], []>} : vector<8x128xf32>, vector<128x128xf32>, vector<8x128xf32> -> vector<8x128xf32>
    %29 = vector.broadcast %14 : vector<1x128xf32> to vector<8x128xf32>
    %30 = arith.addf %28, %29 : vector<8x128xf32>
    %c0_27 = arith.constant 0 : index
    %c0_28 = arith.constant 0 : index
    %c0_29 = arith.constant 0 : index
    %31 = vector.load %arg6[%c0_27, %c0_28, %c0_29] : memref<1x8x128xf32, #tpu.memory_space<vmem>>, vector<1x8x128xf32>
    %32 = vector.shape_cast %31 : vector<1x8x128xf32> to vector<8x128xf32>
    %33 = vector.shape_cast %30 : vector<8x128xf32> to vector<1x8x128xf32>
    tpu.vector_store %arg6[%c0_27, %c0_28, %c0_29], %33 {strides = array<i32>} : memref<1x8x128xf32, #tpu.memory_space<vmem>>, vector<1x8x128xf32>,
    return
  }
  func.func @transform_0(%arg0: i32) -> (i32, i32, i32) {
    %c0_i32 = arith.constant 0 : i32
    %c0_i32_0 = arith.constant 0 : i32
    %c0_i32_1 = arith.constant 0 : i32
    return %arg0, %c0_i32, %c0_i32_0 : i32, i32, i32
  }
  func.func @transform_1(%arg0: i32) -> (i32, i32, i32) {
    %c0_i32 = arith.constant 0 : i32
    %c0_i32_0 = arith.constant 0 : i32
    %c0_i32_1 = arith.constant 0 : i32
    return %arg0, %c0_i32, %c0_i32_0 : i32, i32, i32
  }
  func.func @transform_2(%arg0: i32) -> (i32, i32) {
    %c0_i32 = arith.constant 0 : i32
    %c0_i32_0 = arith.constant 0 : i32
    %c0_i32_1 = arith.constant 0 : i32
    return %c0_i32, %c0_i32_0 : i32, i32
  }
  func.func @transform_3(%arg0: i32) -> (i32, i32, i32) {
    %c0_i32 = arith.constant 0 : i32
    %c0_i32_0 = arith.constant 0 : i32
    %c0_i32_1 = arith.constant 0 : i32
    %c0_i32_2 = arith.constant 0 : i32
    return %c0_i32, %c0_i32_0, %c0_i32_1 : i32, i32, i32
  }
  func.func @transform_4(%arg0: i32) -> (i32, i32) {
    %c0_i32 = arith.constant 0 : i32
    %c0_i32_0 = arith.constant 0 : i32
    %c0_i32_1 = arith.constant 0 : i32
    return %c0_i32, %c0_i32_0 : i32, i32
  }
  func.func @transform_5(%arg0: i32) -> (i32, i32, i32) {
    %c0_i32 = arith.constant 0 : i32
    %c0_i32_0 = arith.constant 0 : i32
    %c0_i32_1 = arith.constant 0 : i32
    return %arg0, %c0_i32, %c0_i32_0 : i32, i32, i32
  }
}

</mosaic_0001>

<bundles_post_ra>
// kernel: tpu_custom_call.1
= control target key start
LH: loop header
LB: loop body
LE: loop exit
PB: predicated region body
PF: predicated region fallthrough
CT: control target
= control target key end

     0   :  { %10 = vsyncpa [#allocation3], 0  ;;  %s1387_s0 = inlined_call_operand.vmem [shape: f32[1,64,16], index: 0, kind: input, shape index: {}]   ;;  %s1388_s1 = inlined_call_operand.vmem [shape: f32[1,64,64], index: 1, kind: input, shape index: {}]   ;;  %s1389_s2 = inlined_call_operand.vmem [shape: f32[8,64], index: 2, kind: input, shape index: {}]   ;;  %s1390_s3 = inlined_call_operand.hbm [shape: f32[3,128,128], index: 3, kind: input, shape index: {}]   ;;  %s1391_s4 = inlined_call_operand.vmem [shape: f32[8,128], index: 4, kind: input, shape index: {}]   ;;  %s1392_s5 = inlined_call_operand.hbm [shape: f32[1,8,128], index: 5, kind: output, shape index: {}]  }
   0x1   :  { %11 = vsyncpa [#allocation4], 0  ;;  %s1197_s18 = smov [#allocation2]   ;;  %s1149_s22 = scalar_lea.hbm %s1390_s3, 6144 }
   0x2   :  { %s23_s19 = sshll.u32 %s1197_s18, 4  ;;  %p1150_p0 = scmp.ne.s32.totalorder %s1390_s3, %s1149_s22  ;;  %s24_s19 = int_to_ptr.vmem [resolvable:$true] %s23_s19 }
   0x3   :  { %p1153_p1 = scmp.lt.u32.totalorder %s1149_s22, %s1390_s3 }
   0x5   :  { %p1155_p2 = pnand %p1153_p1, %p1150_p0 }
   0x7   :  { %1158 = shalt.err (!%p1155_p2)
}
   0x8   :  { %s1159_s27 = scalar_lea.vmem %s24_s19, 6144  ;;  %p1164_p4 = scmp.lt.s32.totalorder %s24_s19, %s24_s19 }
   0x9   :  { %p1160_p3 = scmp.ne.s32.totalorder %s24_s19, %s1159_s27  ;;  %p1165_p5 = scmp.lt.s32.totalorder %s1159_s27, %s1159_s27 }
   0xb   :  { %p1166_p6 = por %p1165_p5, %p1164_p4 }
   0xd   :  { %p1167_p7 = pnand %p1166_p6, %p1160_p3 }
   0xf   :  { %1170 = shalt.err (!%p1167_p7)
}
  0x10   :  { %s1198_s28 = smov 128   ;;  %s1199_s29 = smov 8  }
  0x11   :  { %29 = dma.hbm_to_vmem [thread:$0]  %s1390_s3, 6144, %s24_s19, [#allocation3], %s1198_s28, %s1198_s28, %s1199_s29  }
  0x12   :  { %1193 = dma.done.wait [#allocation3], 6144  }
  0x13   :  { %1194 = vsyncadd [#allocation3], 4294961152  ;;  %vm91_vm0 = vcmask 130048   ;;  %v52_v0 = vld [vmem:[#allocation2] sm:$0xff]  ;;  %v53_v1 = vld [vmem:[#allocation2 + $0x8] sm:$0xff]  ;;  %vm225_vm1 = vcmask 523264  }
  0x14   :  { %v35_v2 = vld [vmem:[%s1387_s0] sm:$0xff]  ;;  %v1038_v3 = vpack.c.bf16 %v53_v1, %v52_v0  ;;  %v36_v4 = vld [vmem:[%s1387_s0 + $0x8] sm:$0xff]  ;;  %v37_v5 = vld [vmem:[%s1387_s0 + $0x10] sm:$0xff]  ;;  %vm1201_vm2 = vmmov 0   ;;  %s1203_s18 = smov [#allocation5]  }
  0x15   :  { %872 = vmatprep.mubr.msk.f32.mxu1 %vm91_vm0, %v35_v2  ;;  %v38_v6 = vld [vmem:[%s1387_s0 + $0x18] sm:$0xff]  ;;  %v39_v7 = vld [vmem:[%s1387_s0 + $0x20] sm:$0xff]  ;;  %v40_v8 = vld [vmem:[%s1387_s0 + $0x28] sm:$0xff]  ;;  %s739_s19 = sshll.u32 %s1203_s18, 4  ;;  %s740_s19 = int_to_ptr.vmem [resolvable:$true] %s739_s19 }
  0x16   :  { %1039 = vmatprep.subr.bf16.mxu1 %v1038_v3  ;;  %v41_v9 = vld [vmem:[%s1387_s0 + $0x30] sm:$0xff]  ;;  %v42_v10 = vld [vmem:[%s1387_s0 + $0x38] sm:$0xff]  ;;  %v1281_v11 = vld [vmem:[%s1388_s1] sm:$0xff]  ;;  %s1171_s20 = scalar_lea.vmem %s740_s19, 128  ;;  %p1176_p9 = scmp.lt.s32.totalorder %s740_s19, %s740_s19 }
  0x17   :  { %1041 = vmatpush3.bf16.msra.mxu1 %v1038_v3  ;;  %v55_v12 = vld [vmem:[#allocation2 + $0x80] sm:$0xff]  ;;  %v56_v13 = vld [vmem:[#allocation2 + $0x88] sm:$0xff]  ;;  %v57_v14 = vld [vmem:[#allocation2 + $0x90] sm:$0xff]  ;;  %p1172_p8 = scmp.ne.s32.totalorder %s740_s19, %s1171_s20  ;;  %p1177_p10 = scmp.lt.s32.totalorder %s1171_s20, %s1171_s20 }
  0x18   :  { %v1058_v15 = vpack.c.bf16 %v56_v13, %v55_v12  ;;  %v58_v16 = vld [vmem:[#allocation2 + $0x98] sm:$0xff]  ;;  %v59_v18 = vld [vmem:[#allocation2 + $0xa0] sm:$0xff]  ;;  %v60_v19 = vld [vmem:[#allocation2 + $0xa8] sm:$0xff] }
  0x19   :  { %v1062_v17 = vpack.c.bf16 %v58_v16, %v57_v14  ;;  %v1066_v20 = vpack.c.bf16 %v60_v19, %v59_v18  ;;  %v61_v21 = vld [vmem:[#allocation2 + $0xb0] sm:$0xff]  ;;  %v62_v22 = vld [vmem:[#allocation2 + $0xb8] sm:$0xff]  ;;  %v63_v24 = vld [vmem:[#allocation2 + $0xc0] sm:$0xff]  ;;  %p1178_p11 = por %p1177_p10, %p1176_p9 }
  0x1a   :  { %873 = vmatmul.mubr.msk.f32.vlgmr.msra.gmra.mrb[0].mxu1 %vm91_vm0, %v36_v4  ;;  %1059 = vmatprep.subr.bf16.mxu0 %v1058_v15  ;;  %v1070_v23 = vpack.c.bf16 %v62_v22, %v61_v21  ;;  %v64_v25 = vld [vmem:[#allocation2 + $0xc8] sm:$0xff]  ;;  %v65_v27 = vld [vmem:[#allocation2 + $0xd0] sm:$0xff]  ;;  %v66_v28 = vld [vmem:[#allocation2 + $0xd8] sm:$0xff] }
  0x1b   :  { %875 = vmatprep.mubr.msk.f32.mxu1 %vm91_vm0, %v37_v5  ;;  %1061 = vmatpush3.bf16.msra.mxu0 %v1058_v15  ;;  %v1074_v26 = vpack.c.bf16 %v64_v25, %v63_v24  ;;  %v1078_v29 = vpack.c.bf16 %v66_v28, %v65_v27  ;;  %v67_v30 = vld [vmem:[#allocation2 + $0xe0] sm:$0xff]  ;;  %v68_v31 = vld [vmem:[#allocation2 + $0xe8] sm:$0xff]  ;;  %v1293_v46 = vld [vmem:[%s1388_s1 + $0x10] sm:$0xff]  ;;  %v1200_v28 = vmov 0.0|0.0   ;;  %p1179_p12 = pnand %p1178_p11, %p1172_p8 }
  0x1c   :  { %1063 = vmatprep.subr.bf16.mxu0 %v1062_v17  ;;  %v1082_v32 = vpack.c.bf16 %v68_v31, %v67_v30  ;;  %v1288_v45 = vld [vmem:[%s1388_s1 + $0x8] sm:$0xff]  ;;  %v1302_v47 = vld [vmem:[%s1388_s1 + $0x18] sm:$0xff]  ;;  %v1307_v48 = vld [vmem:[%s1388_s1 + $0x20] sm:$0xff] }
  0x1d   :  { %v1316_v49 = vld [vmem:[%s1388_s1 + $0x28] sm:$0xff]  ;;  %v1321_v50 = vld [vmem:[%s1388_s1 + $0x30] sm:$0xff]  ;;  %v1330_v51 = vld [vmem:[%s1388_s1 + $0x38] sm:$0xff] }
  0x1e   :  { %876 = vmatmul.mubr.msk.f32.gmra.mrb[2].mxu1 %vm91_vm0, %v38_v6  ;;  %v69_v52 = vld [vmem:[#allocation2 + $0xf0] sm:$0xff]  ;;  %v70_v53 = vld [vmem:[#allocation2 + $0xf8] sm:$0xff]  ;;  %v756_v55 = vld [vmem:[%s1391_s4] ss:$0 sm:$0xff] }
  0x1f   :  { %878 = vmatprep.mubr.msk.f32.mxu1 %vm91_vm0, %v39_v7  ;;  %1065 = vmatpush3.bf16.msra.mxu0 %v1062_v17  ;;  %v1086_v54 = vpack.c.bf16 %v70_v53, %v69_v52  ;;  %v72_v30 = vld [vmem:[#allocation2 + $0x100] sm:$0xff]  ;;  %v73_v31 = vld [vmem:[#allocation2 + $0x108] sm:$0xff]  ;;  %v87_v52 = vld [vmem:[#allocation2 + $0x178] sm:$0xff] }
  0x20   :  { %1067 = vmatprep.subr.bf16.mxu0 %v1066_v20 }
  0x22   :  { %879 = vmatmul.mubr.msk.f32.gmra.mrb[4].mxu1 %vm91_vm0, %v40_v8 }
  0x23   :  { %881 = vmatprep.mubr.msk.f32.mxu1 %vm91_vm0, %v41_v9  ;;  %1069 = vmatpush3.bf16.msra.mxu0 %v1066_v20 }
  0x24   :  { %1071 = vmatprep.subr.bf16.mxu0 %v1070_v23 }
  0x26   :  { %882 = vmatmul.mubr.msk.f32.gmra.mrb[6].mxu1 %vm91_vm0, %v42_v10 }
  0x27   :  { %900 = vmatprep.mubr.msk.f32.mxu1 %vm225_vm1, %v1281_v11  ;;  %1073 = vmatpush3.bf16.msra.mxu0 %v1070_v23 }
  0x28   :  { %1075 = vmatprep.subr.bf16.mxu0 %v1074_v26 }
  0x2b   :  { %1077 = vmatpush3.bf16.msra.mxu0 %v1074_v26 }
  0x2c   :  { %1079 = vmatprep.subr.bf16.mxu0 %v1078_v29 }
  0x2f   :  { %1081 = vmatpush3.bf16.msra.mxu0 %v1078_v29  ;;  %v1202_v29 = vmov 0.0  }
  0x30   :  { %1083 = vmatprep.subr.bf16.mxu0 %v1082_v32 }
  0x33   :  { %1085 = vmatpush3.bf16.msra.mxu0 %v1082_v32  ;;  %v74_v32 = vld [vmem:[#allocation2 + $0x110] sm:$0xff] }
  0x34   :  { %1087 = vmatprep.subr.bf16.mxu0 %v1086_v54 }
  0x37   :  { %1089 = vmatpush3.bf16.msra.mxu0 %v1086_v54  ;;  %v765_v54 = vld [vmem:[%s1391_s4 + $0x1] ss:$0 sm:$0xff] }
  0x38   :  { %1118 = vmatprep.subr.bf16.mxu0 %v1200_v28 }
  0xed   :  { %v874_v33 = vpop.f32.mrb[0].mxu1 }
  0xee   :  { %v182_v34 = vpop.f32.mrb[1].mxu1 }
  0xef   :  { %v1042_v35 = vpack.c.bf16 %v874_v33, %v182_v34  ;;  %v1119_v33 = vpack.c.bf16 %v73_v31, %v72_v30  ;;  %v75_v34 = vld [vmem:[#allocation2 + $0x118] sm:$0xff] }
  0xf1   :  { %v877_v36 = vpop.f32.mrb[2].mxu1  ;;  %1043 = vmatprep.subr.bf16.mxu1 %v1042_v35 }
  0xf2   :  { %v192_v37 = vpop.f32.mrb[3].mxu1  ;;  %1045 = vmatpush3.bf16.msra.mxu1 %v1042_v35  ;;  %v1122_v35 = vpack.c.bf16 %v75_v34, %v74_v32 }
  0xf3   :  { %v1046_v38 = vpack.c.bf16 %v877_v36, %v192_v37  ;;  %v76_v36 = vld [vmem:[#allocation2 + $0x120] sm:$0xff]  ;;  %v77_v37 = vld [vmem:[#allocation2 + $0x128] sm:$0xff] }
  0xf5   :  { %v880_v39 = vpop.f32.mrb[4].mxu1  ;;  %1047 = vmatprep.subr.bf16.mxu1 %v1046_v38 }
  0xf6   :  { %v202_v40 = vpop.f32.mrb[5].mxu1  ;;  %1049 = vmatpush3.bf16.msra.mxu1 %v1046_v38  ;;  %v1125_v38 = vpack.c.bf16 %v77_v37, %v76_v36 }
  0xf7   :  { %v1050_v41 = vpack.c.bf16 %v880_v39, %v202_v40  ;;  %v78_v39 = vld [vmem:[#allocation2 + $0x130] sm:$0xff]  ;;  %v79_v40 = vld [vmem:[#allocation2 + $0x138] sm:$0xff] }
  0xf9   :  { %v883_v42 = vpop.f32.mrb[6].mxu1  ;;  %1051 = vmatprep.subr.bf16.mxu1 %v1050_v41 }
  0xfa   :  { %v212_v43 = vpop.f32.mrb[7].mxu1  ;;  %1053 = vmatpush3.bf16.msra.mxu1 %v1050_v41  ;;  %v1128_v41 = vpack.c.bf16 %v79_v40, %v78_v39 }
  0xfb   :  { %v1054_v44 = vpack.c.bf16 %v883_v42, %v212_v43  ;;  %v80_v42 = vld [vmem:[#allocation2 + $0x140] sm:$0xff]  ;;  %v81_v43 = vld [vmem:[#allocation2 + $0x148] sm:$0xff] }
  0xfd   :  { %1055 = vmatprep.subr.bf16.mxu1 %v1054_v44 }
  0xfe   :  { %1057 = vmatpush3.bf16.msra.mxu1 %v1054_v44  ;;  %v1131_v44 = vpack.c.bf16 %v81_v43, %v80_v42 }
 0x101   :  { %901 = vmatmul.mubr.msk.f32.vlgmr.msra.gmra.mrb[8].mxu1 %vm225_vm1, %v1288_v45 }
 0x102   :  { %903 = vmatprep.mubr.msk.f32.mxu1 %vm225_vm1, %v1293_v46 }
 0x105   :  { %904 = vmatmul.mubr.msk.f32.gmra.mrb[10].mxu1 %vm225_vm1, %v1302_v47 }
 0x106   :  { %906 = vmatprep.mubr.msk.f32.mxu1 %vm225_vm1, %v1307_v48 }
 0x109   :  { %907 = vmatmul.mubr.msk.f32.gmra.mrb[12].mxu1 %vm225_vm1, %v1316_v49 }
 0x10a   :  { %909 = vmatprep.mubr.msk.f32.mxu1 %vm225_vm1, %v1321_v50 }
 0x10d   :  { %910 = vmatmul.mubr.msk.f32.gmra.mrb[14].mxu1 %vm225_vm1, %v1330_v51 }
 0x10e   :  { %972 = vmatprep.mubr.msk.f32.mxu1 %vm225_vm1, %v1281_v11 }
 0x1d4   :  { %v902_v56 = vpop.f32.mrb[8].mxu1 }
 0x1d5   :  { %v322_v57 = vadd.f32 %v902_v56, %v756_v55  ;;  %v316_v58 = vpop.f32.mrb[9].mxu1 }
 0x1d6   :  { %v317_v59 = vadd.f32 %v756_v55, %v316_v58 }
 0x1d7   :  { %v356_v62 = vmax.f32 %v322_v57, 0.0 }
 0x1d8   :  { %v905_v60 = vpop.f32.mrb[10].mxu1  ;;  %v355_v61 = vmax.f32 %v317_v59, 0.0 }
 0x1d9   :  { %v332_v63 = vadd.f32 %v905_v60, %v756_v55  ;;  %v326_v0 = vpop.f32.mrb[11].mxu1 }
 0x1da   :  { %v327_v1 = vadd.f32 %v756_v55, %v326_v0  ;;  %944 = vmatprep.mubr.f32.mxu0 %v355_v61 }
 0x1db   :  { %945 = vmatmul.mubr.f32.vlgmr.msra.gmra.mrb[0].mxu0 %v356_v62  ;;  %v358_v4 = vmax.f32 %v332_v63, 0.0 }
 0x1dc   :  { %v357_v2 = vmax.f32 %v327_v1, 0.0  ;;  %v908_v3 = vpop.f32.mrb[12].mxu1  ;;  %1120 = vmatpush3.bf16.msra.mxu0 %v1119_v33 }
 0x1dd   :  { %v342_v5 = vadd.f32 %v908_v3, %v756_v55  ;;  %v336_v6 = vpop.f32.mrb[13].mxu1  ;;  %1121 = vmatprep.subr.bf16.mxu0 %v1200_v28 }
 0x1de   :  { %v337_v7 = vadd.f32 %v756_v55, %v336_v6  ;;  %947 = vmatprep.mubr.f32.mxu0 %v357_v2 }
 0x1df   :  { %948 = vmatmul.mubr.f32.gmra.mrb[2].mxu0 %v358_v4  ;;  %v360_v10 = vmax.f32 %v342_v5, 0.0 }
 0x1e0   :  { %v359_v8 = vmax.f32 %v337_v7, 0.0  ;;  %v911_v9 = vpop.f32.mrb[14].mxu1  ;;  %1123 = vmatpush3.bf16.msra.mxu0 %v1122_v35 }
 0x1e1   :  { %v352_v11 = vadd.f32 %v911_v9, %v756_v55  ;;  %v346_v12 = vpop.f32.mrb[15].mxu1  ;;  %1124 = vmatprep.subr.bf16.mxu0 %v1200_v28 }
 0x1e2   :  { %v347_v13 = vadd.f32 %v756_v55, %v346_v12  ;;  %950 = vmatprep.mubr.f32.mxu0 %v359_v8 }
 0x1e3   :  { %951 = vmatmul.mubr.f32.gmra.mrb[4].mxu0 %v360_v10  ;;  %v362_v15 = vmax.f32 %v352_v11, 0.0 }
 0x1e4   :  { %v361_v14 = vmax.f32 %v347_v13, 0.0  ;;  %1126 = vmatpush3.bf16.msra.mxu0 %v1125_v38 }
 0x1e5   :  { %1127 = vmatprep.subr.bf16.mxu0 %v1200_v28 }
 0x1e6   :  { %953 = vmatprep.mubr.f32.mxu0 %v361_v14 }
 0x1e7   :  { %954 = vmatmul.mubr.f32.gmra.mrb[6].mxu0 %v362_v15 }
 0x1e8   :  { %1035 = vmatprep.mubr.msk.f32.mxu0 %vm1201_vm2, %v1202_v29  ;;  %1129 = vmatpush3.bf16.msra.mxu0 %v1128_v41 }
 0x1e9   :  { %1130 = vmatprep.subr.bf16.mxu0 %v1200_v28 }
 0x1ec   :  { %1132 = vmatpush3.bf16.msra.mxu0 %v1131_v44 }
 0x1ed   :  { %1133 = vmatprep.subr.bf16.mxu0 %v1200_v28 }
 0x2ae   :  { %v946_v16 = vpop.f32.mrb[0].mxu0 }
 0x2af   :  { %v429_v17 = vpop.f32.mrb[1].mxu0 }
 0x2b0   :  { %v1090_v18 = vpack.c.bf16 %v946_v16, %v429_v17 }
 0x2b2   :  { %v949_v19 = vpop.f32.mrb[2].mxu0  ;;  %1091 = vmatprep.subr.bf16.mxu1 %v1090_v18 }
 0x2b3   :  { %v439_v20 = vpop.f32.mrb[3].mxu0  ;;  %1093 = vmatpush3.bf16.msra.mxu1 %v1090_v18 }
 0x2b4   :  { %v1094_v21 = vpack.c.bf16 %v949_v19, %v439_v20  ;;  %v51_v19 = vld [vmem:[%s1389_s2] sm:$0xff] }
 0x2b6   :  { %v952_v22 = vpop.f32.mrb[4].mxu0  ;;  %1095 = vmatprep.subr.bf16.mxu1 %v1094_v21 }
 0x2b7   :  { %v449_v23 = vpop.f32.mrb[5].mxu0  ;;  %1097 = vmatpush3.bf16.msra.mxu1 %v1094_v21 }
 0x2b8   :  { %v1098_v24 = vpack.c.bf16 %v952_v22, %v449_v23  ;;  %v775_v22 = vld [vmem:[%s1391_s4 + $0x2] ss:$0 sm:$0xff] }
 0x2ba   :  { %v955_v25 = vpop.f32.mrb[6].mxu0  ;;  %1099 = vmatprep.subr.bf16.mxu1 %v1098_v24 }
 0x2bb   :  { %v459_v26 = vpop.f32.mrb[7].mxu0  ;;  %1101 = vmatpush3.bf16.msra.mxu1 %v1098_v24 }
 0x2bc   :  { %v1102_v27 = vpack.c.bf16 %v955_v25, %v459_v26 }
 0x2be   :  { %1103 = vmatprep.subr.bf16.mxu1 %v1102_v27 }
 0x2bf   :  { %1105 = vmatpush3.bf16.msra.mxu1 %v1102_v27 }
 0x2c0   :  { %1106 = vmatprep.subr.bf16.mxu1 %v1200_v28 }
 0x2c2   :  { %973 = vmatmul.mubr.msk.f32.vlgmr.msra.gmra.mrb[16].mxu1 %vm225_vm1, %v1288_v45  ;;  %v82_v45 = vld [vmem:[#allocation2 + $0x150] sm:$0xff] }
 0x2c3   :  { %975 = vmatprep.mubr.msk.f32.mxu1 %vm225_vm1, %v1293_v46  ;;  %v83_v46 = vld [vmem:[#allocation2 + $0x158] sm:$0xff] }
 0x2c6   :  { %976 = vmatmul.mubr.msk.f32.gmra.mrb[18].mxu1 %vm225_vm1, %v1302_v47  ;;  %v1134_v47 = vpack.c.bf16 %v83_v46, %v82_v45 }
 0x2c7   :  { %978 = vmatprep.mubr.msk.f32.mxu1 %vm225_vm1, %v1307_v48  ;;  %v84_v48 = vld [vmem:[#allocation2 + $0x160] sm:$0xff] }
 0x2c8   :  { %1135 = vmatpush3.bf16.msra.mxu0 %v1134_v47 }
 0x2c9   :  { %1136 = vmatprep.subr.bf16.mxu0 %v1200_v28 }
 0x2ca   :  { %979 = vmatmul.mubr.msk.f32.gmra.mrb[20].mxu1 %vm225_vm1, %v1316_v49  ;;  %v85_v49 = vld [vmem:[#allocation2 + $0x168] sm:$0xff] }
 0x2cb   :  { %981 = vmatprep.mubr.msk.f32.mxu1 %vm225_vm1, %v1321_v50  ;;  %v1137_v50 = vpack.c.bf16 %v85_v49, %v84_v48 }
 0x2cd   :  { %1138 = vmatpush3.bf16.msra.mxu0 %v1137_v50 }
 0x2ce   :  { %982 = vmatmul.mubr.msk.f32.gmra.mrb[22].mxu1 %vm225_vm1, %v1330_v51  ;;  %v86_v51 = vld [vmem:[#allocation2 + $0x170] sm:$0xff]  ;;  %1139 = vmatprep.subr.bf16.mxu0 %v1200_v28 }
 0x2cf   :  { %1000 = vmatprep.mubr.msk.f32.mxu1 %vm1201_vm2, %v1202_v29  ;;  %v1140_v53 = vpack.c.bf16 %v87_v52, %v86_v51 }
 0x2d1   :  { %1141 = vmatpush3.bf16.msra.mxu0 %v1140_v53 }
 0x395   :  { %v974_v55 = vpop.f32.mrb[16].mxu1 }
 0x396   :  { %v544_v56 = vadd.f32 %v974_v55, %v765_v54  ;;  %v538_v57 = vpop.f32.mrb[17].mxu1 }
 0x397   :  { %v539_v58 = vadd.f32 %v765_v54, %v538_v57 }
 0x398   :  { %v578_v59 = vmax.f32 %v544_v56, 0.0 }
 0x399   :  { %v577_v60 = vmax.f32 %v539_v58, 0.0  ;;  %v977_v61 = vpop.f32.mrb[18].mxu1 }
 0x39a   :  { %v554_v62 = vadd.f32 %v977_v61, %v765_v54  ;;  %v548_v63 = vpop.f32.mrb[19].mxu1 }
 0x39b   :  { %v1107_v0 = vpack.c.bf16 %v578_v59, %v577_v60  ;;  %v549_v1 = vadd.f32 %v765_v54, %v548_v63 }
 0x39c   :  { %v580_v2 = vmax.f32 %v554_v62, 0.0 }
 0x39d   :  { %v579_v3 = vmax.f32 %v549_v1, 0.0  ;;  %v980_v4 = vpop.f32.mrb[20].mxu1  ;;  %1108 = vmatpush3.bf16.msra.mxu1 %v1107_v0 }
 0x39e   :  { %v564_v5 = vadd.f32 %v980_v4, %v765_v54  ;;  %v558_v6 = vpop.f32.mrb[21].mxu1  ;;  %1109 = vmatprep.subr.bf16.mxu1 %v1200_v28 }
 0x39f   :  { %v1110_v7 = vpack.c.bf16 %v580_v2, %v579_v3  ;;  %v559_v8 = vadd.f32 %v765_v54, %v558_v6 }
 0x3a0   :  { %v582_v9 = vmax.f32 %v564_v5, 0.0 }
 0x3a1   :  { %v581_v10 = vmax.f32 %v559_v8, 0.0  ;;  %v983_v11 = vpop.f32.mrb[22].mxu1  ;;  %1111 = vmatpush3.bf16.msra.mxu1 %v1110_v7 }
 0x3a2   :  { %v574_v12 = vadd.f32 %v983_v11, %v765_v54  ;;  %v568_v13 = vpop.f32.mrb[23].mxu1  ;;  %1112 = vmatprep.subr.bf16.mxu1 %v1200_v28 }
 0x3a3   :  { %v1113_v14 = vpack.c.bf16 %v582_v9, %v581_v10  ;;  %v569_v15 = vadd.f32 %v765_v54, %v568_v13 }
 0x3a4   :  { %v584_v16 = vmax.f32 %v574_v12, 0.0 }
 0x3a5   :  { %v583_v17 = vmax.f32 %v569_v15, 0.0  ;;  %1114 = vmatpush3.bf16.msra.mxu1 %v1113_v14 }
 0x3a6   :  { %1115 = vmatprep.subr.bf16.mxu1 %v1200_v28 }
 0x3a7   :  { %v1116_v18 = vpack.c.bf16 %v584_v16, %v583_v17 }
 0x3a9   :  { %1117 = vmatpush3.bf16.msra.mxu1 %v1116_v18 }
 0x3ac   :  { %1001 = vmatmul.mubr.msk.f32.vlgmr.msra.gmra.mrb[24].mxu1 %vm225_vm1, %v51_v19 }
 0x47f   :  { %v654_v20 = vpop.f32.mrb[24].mxu1 }
 0x480   :  { %v1002_v21 = vpop.f32.mrb[25].mxu1  ;;  %1036 = vmatmul.mubr.f32.vlgmr.msra.gmra.mrb[8].mxu0 %v654_v20 }
 0x553   :  { %v728_v23 = vpop.f32.mrb[8].mxu0 }
 0x554   :  { %v729_v24 = vadd.f32 %v775_v22, %v728_v23  ;;  %v1037_v25 = vpop.f32.mrb[9].mxu0 }
 0x556   :  { %732 = vst [vmem:[#allocation5] sm:$0xff] %v729_v24 }
 0x557   :  { %1182 = shalt.err (!%p1179_p12)
}
 0x558   :  { %s1183_s22 = scalar_lea.hbm %s1392_s5, 128 }
 0x559   :  { %p1184_p13 = scmp.ne.s32.totalorder %s1392_s5, %s1183_s22  ;;  %p1187_p0 = scmp.lt.u32.totalorder %s1183_s22, %s1392_s5 }
 0x55b   :  { %p1189_p1 = pnand %p1187_p0, %p1184_p13 }
 0x55d   :  { %1192 = shalt.err (!%p1189_p1)
}
 0x55e   :  { %742 = dma.vmem_to_hbm [thread:$0]  %s740_s19, 128, %s1392_s5, [#allocation4]  }
 0x55f   :  { %1195 = dma.done.wait [#allocation4], 128  }
 0x560   :  { %1196 = vsyncadd [#allocation4], 4294967168 }
 0x561   :  { %746 = vsyncpa [#allocation3], 1 }
 0x562   :  { %747 = vsyncpa [#allocation4], 1 }

</bundles_post_ra>
